<compile_context>
chip_gen: v7x
topology: tpu7x:2x2x1
jax: 0.10.0
libtpu: 0.0.40
codegen_flags: <defaults>
</compile_context>

<pallas_src>
import functools

import jax
import jax.numpy as jnp
from jax.experimental import pallas as pl
from jax.experimental.pallas import tpu as pltpu


def _layernorm_kernel(x_ref, scale_ref, bias_ref, o_ref, *, eps):
    x = x_ref[...].astype(jnp.float32)                 # (tm, D)
    d = x.shape[-1]

    mean = jnp.sum(x, axis=-1, keepdims=True) * (1.0 / d)      # (tm, 1)
    # Two-pass (centered) variance for accuracy; the centered values are only
    # consumed inside the reduction, not re-materialized for the output pass.
    var = jnp.sum((x - mean) * (x - mean), axis=-1, keepdims=True) / (d - 1)
    std = jnp.sqrt(var)
    inv = 1.0 / (std + eps)                                     # (tm, 1)

    # out = scale * (x - mean) * inv + bias
    #     = x * (scale * inv) + (bias - mean * (scale * inv))
    # -> x is read once for the output; no (tm, D) centered temp is stored.
    a = scale_ref[...] * inv                                    # (tm, D)
    o_ref[...] = (x * a + (bias_ref[...] - mean * a)).astype(o_ref.dtype)


def _vmem_budget():
    """(target_block_bytes, vmem_limit_bytes), chip-aware with a safe fallback."""
    try:
        cap = int(pltpu.get_tpu_info().vmem_capacity_bytes)
    except Exception:
        cap = 64 * 1024 * 1024                     # conservative (v7x-sized)
    if cap >= 100 * 1024 * 1024:                   # v5e / v6e: 128 MiB physical
        return 4 << 20, 64 << 20
    return 2 << 20, 32 << 20                       # v7x: 64 MiB physical per TC


def _choose_block_rows(num_rows, d, dtype, *, target_block_bytes, min_grid_steps=4):
    """Row-tile size: ~target_block_bytes, native sublane multiple, and small
    enough that the grid has >= min_grid_steps steps when the input allows."""
    itemsize = jnp.dtype(dtype).itemsize
    # Sub-32-bit dtypes pack rows along sublanes: f32->8, bf16->16, 8-bit->32.
    sublane = 8 * max(1, 4 // max(1, itemsize))

    bytes_per_row = d * max(itemsize, 4)           # kernel computes in f32
    rows_target = max(sublane,
                      (target_block_bytes // bytes_per_row) // sublane * sublane)
    rows_needed = max(sublane, pl.cdiv(num_rows, sublane) * sublane)
    block = int(min(rows_target, rows_needed))

    # Megacore / pipelining: keep >= min_grid_steps grid iterations when the
    # input is big enough (rounding down only increases the step count).
    if num_rows >= min_grid_steps * sublane:
        cap = max(sublane, (pl.cdiv(num_rows, min_grid_steps) // sublane) * sublane)
        block = min(block, cap)
    return block


def layer_norm(x, scale, bias, *, eps=1e-5, block_rows=None):
    """x: (..., emb_dim). scale, bias: (emb_dim,)."""
    orig_shape = x.shape
    D = orig_shape[-1]
    x2d = x.reshape(-1, D)
    R = x2d.shape[0]

    target_block_bytes, vmem_limit_bytes = _vmem_budget()

    if block_rows is None:
        block_rows = _choose_block_rows(
            R, D, x.dtype, target_block_bytes=target_block_bytes)

    # Guard very wide rows: minimal tile (double-buffered in/out + f32 working
    # set) must fit the VMEM budget.
    itemsize = jnp.dtype(x.dtype).itemsize
    min_tile_bytes = 8 * D * (2 * itemsize + 2 * itemsize + 2 * 4)
    if min_tile_bytes > vmem_limit_bytes:
        # TODO(synk): column-tiled two-pass reduction for very wide emb_dim.
        raise ValueError(
            f"emb_dim={D} too wide for a single row-tile within "
            f"{vmem_limit_bytes} bytes of VMEM; column tiling not implemented.")

    # Cast params to f32 once in the wrapper (not per grid iteration in-kernel).
    scale2d = scale.astype(jnp.float32).reshape(1, D)
    bias2d = bias.astype(jnp.float32).reshape(1, D)

    # NOTE: if D < 128 (tiny demo sizes) vregs are lane-sparse; real models use
    # emb_dim as a multiple of 128, where this layout is fully lane-dense.
    grid = (pl.cdiv(R, block_rows),)   # partial last block -> masked writeback

    out = pl.pallas_call(
        functools.partial(_layernorm_kernel, eps=eps),
        out_shape=jax.ShapeDtypeStruct((R, D), x.dtype),
        grid_spec=pltpu.PrefetchScalarGridSpec(
            num_scalar_prefetch=0,
            grid=grid,
            in_specs=[
                pl.BlockSpec((block_rows, D), lambda i: (i, 0)),
                pl.BlockSpec((1, D), lambda i: (0, 0)),
                pl.BlockSpec((1, D), lambda i: (0, 0)),
            ],
            out_specs=pl.BlockSpec((block_rows, D), lambda i: (i, 0)),
        ),
        compiler_params=pltpu.CompilerParams(
            dimension_semantics=("parallel",),
            vmem_limit_bytes=vmem_limit_bytes,
        ),
    )(x2d, scale2d, bias2d)

    return out.reshape(orig_shape)


def _reference(x, scale, bias, eps=1e-5):
    mean = jnp.mean(x, axis=-1, keepdims=True)
    d = x.shape[-1]
    var = jnp.sum((x - mean) ** 2, axis=-1, keepdims=True) / (d - 1)  # unbiased
    std = jnp.sqrt(var)
    return scale * (x - mean) / (std + eps) + bias


if __name__ == "__main__":
    key = jax.random.PRNGKey(0)
    batch, seq, emb_dim = 2, 8, 32

    x = jax.random.normal(key, (batch, seq, emb_dim), dtype=jnp.float32)
    # deterministic parameter init matching nn.Parameter(torch.ones/zeros(emb_dim))
    scale = jnp.ones((emb_dim,), dtype=jnp.float32)
    bias = jnp.zeros((emb_dim,), dtype=jnp.float32)

    out = jax.block_until_ready(layer_norm(x, scale, bias))
    ref = _reference(x, scale, bias)
    assert out.shape == x.shape
    assert jnp.allclose(out, ref, atol=1e-5, rtol=1e-5), "mismatch vs reference"

    # Partial-block path (row count not a multiple of 8).
    x2 = jax.random.normal(jax.random.PRNGKey(0), (3, 5, emb_dim), dtype=jnp.float32)
    out2 = jax.block_until_ready(layer_norm(x2, scale, bias))
    ref2 = _reference(x2, scale, bias)
    assert out2.shape == x2.shape
    assert jnp.allclose(out2, ref2, atol=1e-5, rtol=1e-5), "mismatch (partial block)"

    # Multi-step-grid path (exercises the megacore clamp: 256 rows -> >=4 steps).
    D3 = 128
    x3 = jax.random.normal(jax.random.PRNGKey(1), (4, 64, D3), dtype=jnp.float32)
    s3 = jnp.ones((D3,), dtype=jnp.float32)
    b3 = jnp.zeros((D3,), dtype=jnp.float32)
    out3 = jax.block_until_ready(layer_norm(x3, s3, b3))
    ref3 = _reference(x3, s3, b3)
    assert out3.shape == x3.shape
    assert jnp.allclose(out3, ref3, atol=1e-5, rtol=1e-5), "mismatch (multi-block)"

    print("KERNEL_OK")
</pallas_src>

<mosaic_0001>
module attributes {stable_mosaic.version = 11 : i64} {
  func.func @_layernorm_kernel(%arg0: i32, %arg1: memref<16x32xf32, #tpu.memory_space<vmem>>, %arg2: memref<1x32xf32, #tpu.memory_space<vmem>>, %arg3: memref<1x32xf32, #tpu.memory_space<vmem>>, %arg4: memref<16x32xf32, #tpu.memory_space<vmem>>) attributes {dimension_semantics = [#tpu.dimension_semantics<parallel>], iteration_bounds = array<i64: 1>, scalar_prefetch = 0 : i64, scratch_operands = 0 : i64, tpu.core_type = #tpu.core_type<tc>, window_params = [{transform_indices = @transform_0, window_bounds = array<i64: 16, 32>}, {pipeline_mode = #tpu.pipeline_mode<synchronous>, transform_indices = @transform_1, window_bounds = array<i64: 1, 32>}, {pipeline_mode = #tpu.pipeline_mode<synchronous>, transform_indices = @transform_2, window_bounds = array<i64: 1, 32>}, {transform_indices = @transform_3, window_bounds = array<i64: 16, 32>}]} {
    %c0 = arith.constant 0 : index
    %c0_0 = arith.constant 0 : index
    %0 = vector.load %arg1[%c0, %c0_0] : memref<16x32xf32, #tpu.memory_space<vmem>>, vector<16x32xf32>
    %cst = arith.constant dense<0.000000e+00> : vector<16xf32>
    %1 = vector.multi_reduction <add>, %0, %cst [1] : vector<16x32xf32> to vector<16xf32>
    %2 = vector.shape_cast %1 : vector<16xf32> to vector<16x1xf32>
    %cst_1 = arith.constant 3.125000e-02 : f32
    %3 = vector.broadcast %cst_1 : f32 to vector<16x1xf32>
    %4 = arith.mulf %2, %3 : vector<16x1xf32>
    %5 = vector.broadcast %4 : vector<16x1xf32> to vector<16x32xf32>
    %6 = arith.subf %0, %5 : vector<16x32xf32>
    %7 = vector.broadcast %4 : vector<16x1xf32> to vector<16x32xf32>
    %8 = arith.subf %0, %7 : vector<16x32xf32>
    %9 = arith.mulf %6, %8 : vector<16x32xf32>
    %cst_2 = arith.constant dense<0.000000e+00> : vector<16xf32>
    %10 = vector.multi_reduction <add>, %9, %cst_2 [1] : vector<16x32xf32> to vector<16xf32>
    %11 = vector.shape_cast %10 : vector<16xf32> to vector<16x1xf32>
    %cst_3 = arith.constant 3.100000e+01 : f32
    %12 = vector.broadcast %cst_3 : f32 to vector<16x1xf32>
    %13 = arith.divf %11, %12 : vector<16x1xf32>
    %14 = math.sqrt %13 : vector<16x1xf32>
    %cst_4 = arith.constant 9.99999974E-6 : f32
    %15 = vector.broadcast %cst_4 : f32 to vector<16x1xf32>
    %16 = arith.addf %14, %15 : vector<16x1xf32>
    %cst_5 = arith.constant 1.000000e+00 : f32
    %17 = vector.broadcast %cst_5 : f32 to vector<16x1xf32>
    %18 = arith.divf %17, %16 : vector<16x1xf32>
    %c0_6 = arith.constant 0 : index
    %c0_7 = arith.constant 0 : index
    %19 = vector.load %arg2[%c0_6, %c0_7] : memref<1x32xf32, #tpu.memory_space<vmem>>, vector<1x32xf32>
    %20 = vector.broadcast %19 : vector<1x32xf32> to vector<16x32xf32>
    %21 = vector.broadcast %18 : vector<16x1xf32> to vector<16x32xf32>
    %22 = arith.mulf %20, %21 : vector<16x32xf32>
    %23 = arith.mulf %0, %22 : vector<16x32xf32>
    %c0_8 = arith.constant 0 : index
    %c0_9 = arith.constant 0 : index
    %24 = vector.load %arg3[%c0_8, %c0_9] : memref<1x32xf32, #tpu.memory_space<vmem>>, vector<1x32xf32>
    %25 = vector.broadcast %4 : vector<16x1xf32> to vector<16x32xf32>
    %26 = arith.mulf %25, %22 : vector<16x32xf32>
    %27 = vector.broadcast %24 : vector<1x32xf32> to vector<16x32xf32>
    %28 = arith.subf %27, %26 : vector<16x32xf32>
    %29 = arith.addf %23, %28 : vector<16x32xf32>
    %c0_10 = arith.constant 0 : index
    %c0_11 = arith.constant 0 : index
    %30 = vector.load %arg4[%c0_10, %c0_11] : memref<16x32xf32, #tpu.memory_space<vmem>>, vector<16x32xf32>
    tpu.vector_store %arg4[%c0_10, %c0_11], %29 {strides = array<i32>} : memref<16x32xf32, #tpu.memory_space<vmem>>, vector<16x32xf32>,
    return
  }
  func.func @transform_0(%arg0: i32) -> (i32, i32) {
    %c0_i32 = arith.constant 0 : i32
    %c0_i32_0 = arith.constant 0 : i32
    return %arg0, %c0_i32 : i32, i32
  }
  func.func @transform_1(%arg0: i32) -> (i32, i32) {
    %c0_i32 = arith.constant 0 : i32
    %c0_i32_0 = arith.constant 0 : i32
    %c0_i32_1 = arith.constant 0 : i32
    return %c0_i32, %c0_i32_0 : i32, i32
  }
  func.func @transform_2(%arg0: i32) -> (i32, i32) {
    %c0_i32 = arith.constant 0 : i32
    %c0_i32_0 = arith.constant 0 : i32
    %c0_i32_1 = arith.constant 0 : i32
    return %c0_i32, %c0_i32_0 : i32, i32
  }
  func.func @transform_3(%arg0: i32) -> (i32, i32) {
    %c0_i32 = arith.constant 0 : i32
    %c0_i32_0 = arith.constant 0 : i32
    return %arg0, %c0_i32 : i32, i32
  }
}

</mosaic_0001>

<bundles_post_ra>
// kernel: tpu_custom_call.1
= control target key start
LH: loop header
LB: loop body
LE: loop exit
PB: predicated region body
PF: predicated region fallthrough
CT: control target
= control target key end

     0   :  { %8 = vsyncpa [#allocation3], 0  ;;  %s244_s0 = inlined_call_operand.hbm [shape: f32[16,32], index: 0, kind: input, shape index: {}]   ;;  %s245_s1 = inlined_call_operand.vmem [shape: f32[1,32], index: 1, kind: input, shape index: {}]   ;;  %s246_s2 = inlined_call_operand.vmem [shape: f32[1,32], index: 2, kind: input, shape index: {}]   ;;  %s247_s3 = inlined_call_operand.hbm [shape: f32[16,32], index: 3, kind: output, shape index: {}]  }
   0x1   :  { %9 = vsyncpa [#allocation4], 0  ;;  %s178_s12 = smov [#allocation2]   ;;  %s130_s16 = scalar_lea.hbm %s244_s0, 256 }
   0x2   :  { %s15_s13 = sshll.u32 %s178_s12, 4  ;;  %p131_p0 = scmp.ne.s32.totalorder %s244_s0, %s130_s16  ;;  %s16_s13 = int_to_ptr.vmem [resolvable:$true] %s15_s13 }
   0x3   :  { %p134_p1 = scmp.lt.u32.totalorder %s130_s16, %s244_s0 }
   0x5   :  { %p136_p2 = pnand %p134_p1, %p131_p0 }
   0x7   :  { %139 = shalt.err (!%p136_p2)
}
   0x8   :  { %s140_s21 = scalar_lea.vmem %s16_s13, 256  ;;  %p145_p4 = scmp.lt.s32.totalorder %s16_s13, %s16_s13 }
   0x9   :  { %p141_p3 = scmp.ne.s32.totalorder %s16_s13, %s140_s21  ;;  %p146_p5 = scmp.lt.s32.totalorder %s140_s21, %s140_s21 }
   0xb   :  { %p147_p6 = por %p146_p5, %p145_p4 }
   0xd   :  { %p148_p7 = pnand %p147_p6, %p141_p3 }
   0xf   :  { %151 = shalt.err (!%p148_p7)
}
  0x10   :  { %s179_s22 = smov 128   ;;  %s180_s23 = smov 8  }
  0x11   :  { %21 = dma.hbm_to_vmem [thread:$0]  %s244_s0, 256, %s16_s13, [#allocation3], %s179_s22, %s179_s22, %s180_s23  }
  0x12   :  { %174 = dma.done.wait [#allocation3], 256  }
  0x13   :  { %175 = vsyncadd [#allocation3], 4294967040  ;;  %vm31_vm0 = vcmask 261120   ;;  %v29_v0 = vld [vmem:[#allocation2] sm:$0xff]  ;;  %v30_v1 = vld [vmem:[#allocation2 + $0x8] sm:$0xff]  ;;  %s181_s29 = smov [#allocation5]  }
  0x14   :  { %v32_v2 = vsel %vm31_vm0, %v29_v0, 0.0  ;;  %v35_v3 = vsel %vm31_vm0, %v30_v1, 0.0  ;;  %v116_v30 = vld [vmem:[%s245_s1] ss:$0 sm:$0xff]  ;;  %s104_s30 = sshll.u32 %s181_s29, 4  ;;  %s105_s30 = int_to_ptr.vmem [resolvable:$true] %s104_s30 }
  0x15   :  { %33 = vadd.xlane.f32.xlu0 %v32_v2  ;;  %v117_v33 = vld [vmem:[%s246_s2] ss:$0 sm:$0xff]  ;;  %s152_s1 = scalar_lea.vmem %s105_s30, 256  ;;  %p157_p9 = scmp.lt.s32.totalorder %s105_s30, %s105_s30 }
  0x16   :  { %p153_p8 = scmp.ne.s32.totalorder %s105_s30, %s152_s1  ;;  %p158_p10 = scmp.lt.s32.totalorder %s152_s1, %s152_s1 }
  0x18   :  { %p159_p11 = por %p158_p10, %p157_p9 }
  0x19   :  { %36 = vadd.xlane.f32.xlu0 %v35_v3 }
  0x1a   :  { %p160_p12 = pnand %p159_p11, %p153_p8 }
  0xa2   :  { %v34_v4 = vpop.xlane.xlu0 %33 }
  0xa3   :  { %v38_v5 = vmul.f32 0.03125, %v34_v4 }
  0xa5   :  { %v40_v6 = vsub.f32 %v29_v0, %v38_v5 }
  0xa6   :  { %v37_v7 = vpop.xlane.xlu0 %36 }
  0xa7   :  { %v39_v8 = vmul.f32 0.03125, %v37_v7  ;;  %v42_v9 = vmul.f32 %v40_v6, %v40_v6 }
  0xa9   :  { %v41_v10 = vsub.f32 %v30_v1, %v39_v8  ;;  %v44_v11 = vsel %vm31_vm0, %v42_v9, 0.0 }
  0xaa   :  { %45 = vadd.xlane.f32.xlu1 %v44_v11 }
  0xab   :  { %v43_v12 = vmul.f32 %v41_v10, %v41_v10 }
  0xad   :  { %v47_v13 = vsel %vm31_vm0, %v43_v12, 0.0 }
  0xae   :  { %48 = vadd.xlane.f32.xlu1 %v47_v13 }
 0x137   :  { %v46_v14 = vpop.xlane.xlu1 %45 }
 0x138   :  { %v51_v15 = vmul.f32 0.032258064, %v46_v14 }
 0x13a   :  { %122 = vrsqrt.f32 %v51_v15  ;;  %vm55_vm1 = vcmp.eq.f32.partialorder %v51_v15, inf  ;;  %v58_v20 = vand.u32 2147483648, %v51_v15  ;;  %vm57_vm2 = vcmp.eq.f32.partialorder %v51_v15, 0.0 }
 0x13b   :  { %v49_v16 = vpop.xlane.xlu1 %48 }
 0x13c   :  { %v52_v17 = vmul.f32 0.032258064, %v49_v16 }
 0x13e   :  { %124 = vrsqrt.f32 %v52_v17  ;;  %vm62_vm3 = vcmp.eq.f32.partialorder %v52_v17, inf  ;;  %v65_v26 = vand.u32 2147483648, %v52_v17  ;;  %vm64_vm4 = vcmp.eq.f32.partialorder %v52_v17, 0.0 }
 0x144   :  { %v123_v18 = vpop.eup %122 }
 0x145   :  { %v54_v19 = vmul.f32 %v123_v18, %v51_v15 }
 0x147   :  { %v56_v21 = vsel %vm55_vm1, %v51_v15, %v54_v19 }
 0x148   :  { %v125_v22 = vpop.eup %124  ;;  %v59_v23 = vsel %vm57_vm2, %v58_v20, %v56_v21 }
 0x149   :  { %v67_v24 = vadd.f32 1e-05, %v59_v23  ;;  %v61_v25 = vmul.f32 %v125_v22, %v52_v17 }
 0x14b   :  { %126 = vrcp.f32 %v67_v24  ;;  %v63_v27 = vsel %vm62_vm3, %v52_v17, %v61_v25 }
 0x14c   :  { %v66_v28 = vsel %vm64_vm4, %v65_v26, %v63_v27 }
 0x14d   :  { %v68_v29 = vadd.f32 1e-05, %v66_v28 }
 0x14f   :  { %128 = vrcp.f32 %v68_v29 }
 0x155   :  { %v127_v31 = vpop.eup %126 }
 0x156   :  { %v80_v32 = vmul.f32 %v127_v31, %v116_v30 }
 0x158   :  { %v85_v34 = vmul.f32 %v80_v32, %v38_v5  ;;  %v82_v37 = vmul.f32 %v80_v32, %v29_v0 }
 0x159   :  { %v129_v35 = vpop.eup %128 }
 0x15a   :  { %v81_v36 = vmul.f32 %v129_v35, %v116_v30  ;;  %v93_v38 = vsub.f32 %v117_v33, %v85_v34 }
 0x15c   :  { %v86_v39 = vmul.f32 %v81_v36, %v39_v8  ;;  %v95_v40 = vadd.f32 %v93_v38, %v82_v37  ;;  %v83_v41 = vmul.f32 %v81_v36, %v30_v1 }
 0x15e   :  { %v94_v42 = vsub.f32 %v117_v33, %v86_v39  ;;  %97 = vst.msk [vmem:[#allocation5] sm:$0xff] %vm31_vm0, %v95_v40 }
 0x160   :  { %v96_v43 = vadd.f32 %v94_v42, %v83_v41 }
 0x162   :  { %98 = vst.msk [vmem:[#allocation5 + $0x8] sm:$0xff] %vm31_vm0, %v96_v43 }
 0x163   :  { %163 = shalt.err (!%p160_p12)
}
 0x164   :  { %s164_s5 = scalar_lea.hbm %s247_s3, 256 }
 0x165   :  { %p165_p13 = scmp.ne.s32.totalorder %s247_s3, %s164_s5  ;;  %p168_p0 = scmp.lt.u32.totalorder %s164_s5, %s247_s3 }
 0x167   :  { %p170_p1 = pnand %p168_p0, %p165_p13 }
 0x169   :  { %173 = shalt.err (!%p170_p1)
}
 0x16a   :  { %110 = dma.vmem_to_hbm [thread:$0]  %s105_s30, 256, %s247_s3, [#allocation4], %s179_s22, %s179_s22, %s180_s23  }
 0x16b   :  { %176 = dma.done.wait [#allocation4], 256  }
 0x16c   :  { %177 = vsyncadd [#allocation4], 4294967040 }
 0x16d   :  { %114 = vsyncpa [#allocation3], 1 }
 0x16e   :  { %115 = vsyncpa [#allocation4], 1 }

</bundles_post_ra>
